<compile_context>
chip_gen: v6e
topology: v6e:2x2x1
jax: 0.10.0
libtpu: 0.0.40
codegen_flags: <defaults>
</compile_context>

<pallas_src>
import functools

import jax
import jax.numpy as jnp
from jax import lax
from jax.experimental import pallas as pl
from jax.experimental.pallas import tpu as pltpu

EPS = 1e-5


def _query_vmem_capacity_bytes():
    try:
        info = pltpu.get_tpu_info()
        cap = getattr(info, "vmem_capacity_bytes", None)
        if cap:
            return int(cap)
    except Exception:
        pass
    return 64 << 20  # conservative (v7x-sized) fallback


_VMEM_CAP = _query_vmem_capacity_bytes()
# v7x: 64 MiB VMEM per TensorCore, 2 TCs/chip.  v5e/v6e: 128 MiB, 1 TC.
_IS_V7X_LIKE = _VMEM_CAP <= (64 << 20)
_TARGET_TILE_BYTES = (2 << 20) if _IS_V7X_LIKE else (4 << 20)
_MIN_GRID_STEPS = 8 if _IS_V7X_LIKE else 2      # keep both v7x TCs fed; no-op cap on 1-TC chips
_VMEM_LIMIT_CAP = int(min(48 << 20, (_VMEM_CAP * 5) // 8))


def _ln_body(x_ref, w_ref, b_ref, o_ref):
    # x_ref: (tm, C)   w_ref/b_ref: (1, C) fp32   o_ref: (tm, C)
    x = x_ref[...].astype(jnp.float32)
    inv_c = jnp.float32(1.0 / x.shape[-1])
    # Single-pass moments: both row reductions can overlap on the XLU.
    s1 = jnp.sum(x, axis=-1, keepdims=True)
    s2 = jnp.sum(x * x, axis=-1, keepdims=True)
    mean = s1 * inv_c
    var = jnp.maximum(s2 * inv_c - mean * mean, 0.0)
    rstd = lax.rsqrt(var + EPS)
    y = (x - mean) * rstd
    y = y * w_ref[...]
    if b_ref is not None:
        y = y + b_ref[...]
    o_ref[...] = y.astype(o_ref.dtype)


def _ln_kernel_bias(x_ref, w_ref, b_ref, o_ref):
    _ln_body(x_ref, w_ref, b_ref, o_ref)


def _ln_kernel_nobias(x_ref, w_ref, o_ref):
    _ln_body(x_ref, w_ref, None, o_ref)


def _sublane_multiple(dtype_bytes):
    # fp32 -> 8, bf16 -> 16, int8/fp8 -> 32 rows per packed sublane group.
    return max(8, 32 // max(1, dtype_bytes))


def _pick_block_rows(rows, C, dtype_bytes, sub):
    """Row tile sized by bytes (~_TARGET_TILE_BYTES), rounded to the sublane
    packing multiple; on multi-TC chips keep the grid long enough to shard."""
    tm = _TARGET_TILE_BYTES // max(1, C * dtype_bytes)
    tm = max(sub, tm - tm % sub)
    if rows <= tm:
        return rows  # single block == full array dims (always a legal block shape)
    if _MIN_GRID_STEPS > 1:
        cap = rows // _MIN_GRID_STEPS
        cap = max(sub, cap - cap % sub)
        tm = min(tm, cap)
    return max(sub, tm)


@functools.partial(jax.jit, static_argnames=("block_rows",))
def layer_norm(x, weight, bias=None, *, block_rows=None):
    """LayerNorm over the last dim of x. weight/bias have shape (C,)."""
    orig_shape = x.shape
    C = orig_shape[-1]
    rows = 1
    for d in orig_shape[:-1]:
        rows *= d
    x2 = x.reshape(rows, C)
    dtype_bytes = jnp.dtype(x.dtype).itemsize
    sub = _sublane_multiple(dtype_bytes)

    if block_rows is None:
        tm = _pick_block_rows(rows, C, dtype_bytes, sub)
    else:
        tm = min(int(block_rows), rows)
        if tm < rows:
            tm = max(sub, tm - tm % sub)  # keep sublane packing / (8,128) rule happy

    grid = (pl.cdiv(rows, tm),)  # no padding copy; Pallas masks the partial last block

    # VMEM budget: 2x in + 2x out tiles (input dtype, double-buffered)
    # + ~3 fp32 in-kernel temporaries (x_f32, x*x, y) + fp32 weight/bias blocks.
    tile_elems = tm * C
    io_bytes = 4 * tile_elems * dtype_bytes
    tmp_bytes = 3 * tile_elems * 4
    wb_bytes = 4 * C * 4
    vmem_limit = int(
        min(max(io_bytes + tmp_bytes + wb_bytes + (2 << 20), 16 << 20), _VMEM_LIMIT_CAP)
    )

    # One-time fp32 cast of params in the wrapper; (1, C) constant-index blocks
    # are only DMA'd once.
    w2 = weight.astype(jnp.float32).reshape(1, C)
    row_spec = pl.BlockSpec((tm, C), lambda i: (i, 0))
    vec_spec = pl.BlockSpec((1, C), lambda i: (0, 0))
    compiler_params = pltpu.CompilerParams(
        dimension_semantics=("parallel",),
        vmem_limit_bytes=vmem_limit,
    )

    if bias is None:
        kernel = _ln_kernel_nobias
        in_specs = [row_spec, vec_spec]
        args = (x2, w2)
    else:
        kernel = _ln_kernel_bias
        in_specs = [row_spec, vec_spec, vec_spec]
        args = (x2, w2, bias.astype(jnp.float32).reshape(1, C))

    out = pl.pallas_call(
        kernel,
        out_shape=jax.ShapeDtypeStruct((rows, C), x.dtype),
        grid_spec=pltpu.PrefetchScalarGridSpec(
            num_scalar_prefetch=0,
            grid=grid,
            in_specs=in_specs,
            out_specs=row_spec,
        ),
        compiler_params=compiler_params,
    )(*args)

    return out.reshape(orig_shape)


def _reference_layer_norm(x, weight, bias):
    x32 = x.astype(jnp.float32)
    mean = jnp.mean(x32, axis=-1, keepdims=True)
    var = jnp.var(x32, axis=-1, keepdims=True)
    y = (x32 - mean) / jnp.sqrt(var + EPS)
    y = y * weight.astype(jnp.float32)
    if bias is not None:
        y = y + bias.astype(jnp.float32)
    return y.astype(x.dtype)


if __name__ == "__main__":
    key = jax.random.PRNGKey(0)
    B, T, C = 2, 8, 32  # batch, seq, hidden (ndim = C)

    kx, kw, kb, kx2, kx3 = jax.random.split(key, 5)
    x = jax.random.normal(kx, (B, T, C), dtype=jnp.float32)

    # Module init: weight = ones(ndim), bias = zeros(ndim); perturb so the
    # affine application is actually exercised.
    weight = jnp.ones((C,), dtype=jnp.float32) + 0.1 * jax.random.normal(kw, (C,))
    bias = 0.1 * jax.random.normal(kb, (C,))

    # bias=True case
    out = jax.block_until_ready(layer_norm(x, weight, bias))
    ref = _reference_layer_norm(x, weight, bias)
    assert out.shape == x.shape and out.dtype == x.dtype
    assert jnp.allclose(out, ref, atol=1e-5, rtol=1e-5), "mismatch (bias=True)"

    # bias=False case (module with bias=None) — specialized no-bias kernel
    out_nb = jax.block_until_ready(layer_norm(x, weight, None))
    ref_nb = _reference_layer_norm(x, weight, None)
    assert jnp.allclose(out_nb, ref_nb, atol=1e-5, rtol=1e-5), "mismatch (bias=False)"

    # Partial-last-block path (rows % tm != 0), lane-dense C.
    R2, C2 = 200, 128
    x3 = jax.random.normal(kx2, (R2, C2), dtype=jnp.float32)
    w3 = jnp.ones((C2,), jnp.float32)
    b3 = jnp.zeros((C2,), jnp.float32)
    out3 = jax.block_until_ready(layer_norm(x3, w3, b3, block_rows=64))
    ref3 = _reference_layer_norm(x3, w3, b3)
    assert jnp.allclose(out3, ref3, atol=1e-5, rtol=1e-5), "mismatch (partial block)"

    # bf16 activations — exercises the sublane-16 tile rounding and fp32 compute.
    x4 = jax.random.normal(kx3, (4, 16, C), dtype=jnp.float32).astype(jnp.bfloat16)
    out4 = jax.block_until_ready(layer_norm(x4, weight, bias))
    ref4 = _reference_layer_norm(x4, weight, bias)
    assert out4.dtype == jnp.bfloat16
    assert jnp.allclose(out4.astype(jnp.float32), ref4.astype(jnp.float32),
                        atol=2e-2, rtol=2e-2), "mismatch (bf16)"

    print("KERNEL_OK")
</pallas_src>

<mosaic_0001>
module attributes {stable_mosaic.version = 11 : i64} {
  func.func @_ln_kernel_bias(%arg0: i32, %arg1: memref<16x32xf32, #tpu.memory_space<vmem>>, %arg2: memref<1x32xf32, #tpu.memory_space<vmem>>, %arg3: memref<1x32xf32, #tpu.memory_space<vmem>>, %arg4: memref<16x32xf32, #tpu.memory_space<vmem>>) attributes {dimension_semantics = [#tpu.dimension_semantics<parallel>], iteration_bounds = array<i64: 1>, scalar_prefetch = 0 : i64, scratch_operands = 0 : i64, tpu.core_type = #tpu.core_type<tc>, window_params = [{transform_indices = @transform_0, window_bounds = array<i64: 16, 32>}, {pipeline_mode = #tpu.pipeline_mode<synchronous>, transform_indices = @transform_1, window_bounds = array<i64: 1, 32>}, {pipeline_mode = #tpu.pipeline_mode<synchronous>, transform_indices = @transform_2, window_bounds = array<i64: 1, 32>}, {transform_indices = @transform_3, window_bounds = array<i64: 16, 32>}]} {
    %c0 = arith.constant 0 : index
    %c0_0 = arith.constant 0 : index
    %0 = vector.load %arg1[%c0, %c0_0] : memref<16x32xf32, #tpu.memory_space<vmem>>, vector<16x32xf32>
    %cst = arith.constant dense<0.000000e+00> : vector<16xf32>
    %1 = vector.multi_reduction <add>, %0, %cst [1] : vector<16x32xf32> to vector<16xf32>
    %2 = vector.shape_cast %1 : vector<16xf32> to vector<16x1xf32>
    %3 = arith.mulf %0, %0 : vector<16x32xf32>
    %cst_1 = arith.constant dense<0.000000e+00> : vector<16xf32>
    %4 = vector.multi_reduction <add>, %3, %cst_1 [1] : vector<16x32xf32> to vector<16xf32>
    %5 = vector.shape_cast %4 : vector<16xf32> to vector<16x1xf32>
    %cst_2 = arith.constant 3.125000e-02 : f32
    %6 = vector.broadcast %cst_2 : f32 to vector<16x1xf32>
    %7 = arith.mulf %2, %6 : vector<16x1xf32>
    %cst_3 = arith.constant 3.125000e-02 : f32
    %8 = vector.broadcast %cst_3 : f32 to vector<16x1xf32>
    %9 = arith.mulf %5, %8 : vector<16x1xf32>
    %10 = arith.mulf %7, %7 : vector<16x1xf32>
    %11 = arith.subf %9, %10 : vector<16x1xf32>
    %cst_4 = arith.constant 0.000000e+00 : f32
    %12 = vector.broadcast %cst_4 : f32 to vector<16x1xf32>
    %13 = arith.maximumf %11, %12 : vector<16x1xf32>
    %cst_5 = arith.constant 9.99999974E-6 : f32
    %14 = vector.broadcast %cst_5 : f32 to vector<16x1xf32>
    %15 = arith.addf %13, %14 : vector<16x1xf32>
    %16 = math.rsqrt %15 : vector<16x1xf32>
    %17 = vector.broadcast %7 : vector<16x1xf32> to vector<16x32xf32>
    %18 = arith.subf %0, %17 : vector<16x32xf32>
    %19 = vector.broadcast %16 : vector<16x1xf32> to vector<16x32xf32>
    %20 = arith.mulf %18, %19 : vector<16x32xf32>
    %c0_6 = arith.constant 0 : index
    %c0_7 = arith.constant 0 : index
    %21 = vector.load %arg2[%c0_6, %c0_7] : memref<1x32xf32, #tpu.memory_space<vmem>>, vector<1x32xf32>
    %22 = vector.broadcast %21 : vector<1x32xf32> to vector<16x32xf32>
    %23 = arith.mulf %20, %22 : vector<16x32xf32>
    %c0_8 = arith.constant 0 : index
    %c0_9 = arith.constant 0 : index
    %24 = vector.load %arg3[%c0_8, %c0_9] : memref<1x32xf32, #tpu.memory_space<vmem>>, vector<1x32xf32>
    %25 = vector.broadcast %24 : vector<1x32xf32> to vector<16x32xf32>
    %26 = arith.addf %23, %25 : vector<16x32xf32>
    %c0_10 = arith.constant 0 : index
    %c0_11 = arith.constant 0 : index
    %27 = vector.load %arg4[%c0_10, %c0_11] : memref<16x32xf32, #tpu.memory_space<vmem>>, vector<16x32xf32>
    tpu.vector_store %arg4[%c0_10, %c0_11], %26 {strides = array<i32>} : memref<16x32xf32, #tpu.memory_space<vmem>>, vector<16x32xf32>,
    return
  }
  func.func @transform_0(%arg0: i32) -> (i32, i32) {
    %c0_i32 = arith.constant 0 : i32
    %c0_i32_0 = arith.constant 0 : i32
    return %arg0, %c0_i32 : i32, i32
  }
  func.func @transform_1(%arg0: i32) -> (i32, i32) {
    %c0_i32 = arith.constant 0 : i32
    %c0_i32_0 = arith.constant 0 : i32
    %c0_i32_1 = arith.constant 0 : i32
    return %c0_i32, %c0_i32_0 : i32, i32
  }
  func.func @transform_2(%arg0: i32) -> (i32, i32) {
    %c0_i32 = arith.constant 0 : i32
    %c0_i32_0 = arith.constant 0 : i32
    %c0_i32_1 = arith.constant 0 : i32
    return %c0_i32, %c0_i32_0 : i32, i32
  }
  func.func @transform_3(%arg0: i32) -> (i32, i32) {
    %c0_i32 = arith.constant 0 : i32
    %c0_i32_0 = arith.constant 0 : i32
    return %arg0, %c0_i32 : i32, i32
  }
}

</mosaic_0001>

<bundles_post_ra>
// kernel: layer_norm.1
= control target key start
LH: loop header
LB: loop body
LE: loop exit
PB: predicated region body
PF: predicated region fallthrough
CT: control target
= control target key end

     0   :  { %8 = vsyncpa [#allocation3], 0  ;;  %s203_s0 = inlined_call_operand.hbm [shape: f32[16,32], index: 0, kind: input, shape index: {}]   ;;  %s204_s1 = inlined_call_operand.vmem [shape: f32[1,32], index: 1, kind: input, shape index: {}]   ;;  %s205_s2 = inlined_call_operand.vmem [shape: f32[1,32], index: 2, kind: input, shape index: {}]   ;;  %s206_s3 = inlined_call_operand.hbm [shape: f32[16,32], index: 3, kind: output, shape index: {}]  }
   0x1   :  { %9 = vsyncpa [#allocation4], 0  ;;  %s155_s12 = smov [#allocation2]  }
   0x2   :  { %s15_s13 = sshll.u32 %s155_s12, 4  ;;  %s16_s13 = int_to_ptr.vmem [resolvable:$true] %s15_s13 }
   0x3   :  { %s119_s14 = scalar_lea.vmem %s16_s13, 256  ;;  %p124_p1 = scmp.lt.s32.totalorder %s16_s13, %s16_s13 }
   0x4   :  { %p120_p0 = scmp.ne.s32.totalorder %s16_s13, %s119_s14  ;;  %p125_p2 = scmp.lt.s32.totalorder %s119_s14, %s119_s14 }
   0x6   :  { %p126_p3 = por %p125_p2, %p124_p1 }
   0x8   :  { %p127_p4 = pnand %p126_p3, %p120_p0 }
   0xa   :  { %130 = shalt.err (!%p127_p4)
}
   0xb   :  { %s156_s15 = smov 128   ;;  %s157_s16 = smov 8  }
   0xc   :  { %21 = dma.hbm_to_vmem [thread:$0]  %s203_s0, 256, %s16_s13, [#allocation3], %s156_s15, %s156_s15, %s157_s16  }
   0xd   :  { %151 = dma.done.wait [#allocation3], 256  }
   0xe   :  { %152 = vsyncadd [#allocation3], 4294967040  ;;  %vm31_vm0 = vcmask 261120   ;;  %v29_v0 = vld [vmem:[#allocation2] sm:$0xff]  ;;  %v30_v1 = vld [vmem:[#allocation2 + $0x8] sm:$0xff]  ;;  %s158_s22 = smov [#allocation5]  }
   0xf   :  { %v32_v2 = vsel %vm31_vm0, %v29_v0, 0.0  ;;  %v38_v3 = vmul.f32 %v29_v0, %v29_v0  ;;  %v39_v4 = vmul.f32 %v30_v1, %v30_v1  ;;  %v35_v6 = vsel %vm31_vm0, %v30_v1, 0.0  ;;  %v101_v26 = vld [vmem:[%s204_s1] ss:$0 sm:$0xff]  ;;  %s89_s23 = sshll.u32 %s158_s22, 4  ;;  %s90_s23 = int_to_ptr.vmem [resolvable:$true] %s89_s23 }
  0x10   :  { %33 = vadd.xlane.f32.xlu0 %v32_v2  ;;  %v102_v28 = vld [vmem:[%s205_s2] ss:$0 sm:$0xff]  ;;  %s131_s1 = scalar_lea.vmem %s90_s23, 256  ;;  %p136_p6 = scmp.lt.s32.totalorder %s90_s23, %s90_s23 }
  0x11   :  { %v40_v5 = vsel %vm31_vm0, %v38_v3, 0.0  ;;  %v43_v7 = vsel %vm31_vm0, %v39_v4, 0.0  ;;  %p132_p5 = scmp.ne.s32.totalorder %s90_s23, %s131_s1  ;;  %p137_p7 = scmp.lt.s32.totalorder %s131_s1, %s131_s1 }
  0x12   :  { %41 = vadd.xlane.f32.xlu1 %v40_v5 }
  0x13   :  { %p138_p8 = por %p137_p7, %p136_p6 }
  0x14   :  { %36 = vadd.xlane.f32.xlu0 %v35_v6 }
  0x15   :  { %p139_p9 = pnand %p138_p8, %p132_p5 }
  0x16   :  { %44 = vadd.xlane.f32.xlu1 %v43_v7 }
  0x99   :  { %v34_v8 = vpop.xlane.xlu0 %33 }
  0x9a   :  { %v46_v9 = vmul.f32 0.03125, %v34_v8 }
  0x9b   :  { %v42_v10 = vpop.xlane.xlu1 %41 }
  0x9c   :  { %v50_v11 = vmul.f32 %v46_v9, %v46_v9  ;;  %v48_v12 = vmul.f32 0.03125, %v42_v10  ;;  %v60_v24 = vsub.f32 %v29_v0, %v46_v9 }
  0x9d   :  { %v37_v13 = vpop.xlane.xlu0 %36 }
  0x9e   :  { %v52_v14 = vsub.f32 %v48_v12, %v50_v11  ;;  %v47_v15 = vmul.f32 0.03125, %v37_v13 }
  0x9f   :  { %v45_v16 = vpop.xlane.xlu1 %44 }
  0xa0   :  { %v54_v17 = vmax.f32 %v52_v14, 0.0  ;;  %v51_v18 = vmul.f32 %v47_v15, %v47_v15  ;;  %v49_v19 = vmul.f32 0.03125, %v45_v16  ;;  %v61_v29 = vsub.f32 %v30_v1, %v47_v15 }
  0xa2   :  { %v56_v20 = vadd.f32 1e-05, %v54_v17  ;;  %v53_v21 = vsub.f32 %v49_v19, %v51_v18 }
  0xa4   :  { %107 = vrsqrt.f32 %v56_v20  ;;  %v55_v22 = vmax.f32 %v53_v21, 0.0 }
  0xa6   :  { %v57_v23 = vadd.f32 1e-05, %v55_v22 }
  0xa8   :  { %109 = vrsqrt.f32 %v57_v23 }
  0xb1   :  { %v108_v25 = vpop.eup %107 }
  0xb2   :  { %v62_v27 = vmul.f32 %v108_v25, %v60_v24 }
  0xb4   :  { %v71_v30 = vmul.f32 %v101_v26, %v62_v27 }
  0xb5   :  { %v110_v31 = vpop.eup %109 }
  0xb6   :  { %v63_v32 = vmul.f32 %v110_v31, %v61_v29  ;;  %v80_v33 = vadd.f32 %v102_v28, %v71_v30 }
  0xb8   :  { %v72_v34 = vmul.f32 %v101_v26, %v63_v32  ;;  %82 = vst.msk [vmem:[#allocation5] sm:$0xff] %vm31_vm0, %v80_v33 }
  0xba   :  { %v81_v35 = vadd.f32 %v102_v28, %v72_v34 }
  0xbc   :  { %83 = vst.msk [vmem:[#allocation5 + $0x8] sm:$0xff] %vm31_vm0, %v81_v35 }
  0xbd   :  { %142 = shalt.err (!%p139_p9)
}
  0xbe   :  { %95 = dma.vmem_to_hbm [thread:$0]  %s90_s23, 256, %s206_s3, [#allocation4], %s156_s15, %s156_s15, %s157_s16  }
  0xbf   :  { %153 = dma.done.wait [#allocation4], 256  }
  0xc0   :  { %154 = vsyncadd [#allocation4], 4294967040 }
  0xc1   :  { %99 = vsyncpa [#allocation3], 1 }
  0xc2   :  { %100 = vsyncpa [#allocation4], 1 }

</bundles_post_ra>
